<compile_context>
chip_gen: v5e
topology: v5e:2x2
jax: 0.10.0
libtpu: 0.0.40
codegen_flags: <defaults>
</compile_context>

<pallas_src>
import functools

import jax
import jax.numpy as jnp
from jax.experimental import pallas as pl
from jax.experimental.pallas import tpu as pltpu

HIDDEN = 512
LANE = 128
SUBLANE = 8


def _round_up(x, m):
    return (x + m - 1) // m * m


def _mlp_kernel(x_ref, w1_ref, b1_ref, w2_ref, b2_ref, w3_ref, b3_ref, o_ref):
    # x arrives as f32 (single HBM read); cast to bf16 on the VPU (plenty of slack).
    x = x_ref[...].astype(w1_ref.dtype)                               # (tb, d_in) bf16

    h1 = jnp.dot(x, w1_ref[...], preferred_element_type=jnp.float32) + b1_ref[...]
    h1 = jnp.maximum(h1, 0.0)                                         # f32 elementwise
    # dropout(p=0.2): identity in eval mode

    h2 = jnp.dot(h1.astype(w2_ref.dtype), w2_ref[...],
                 preferred_element_type=jnp.float32) + b2_ref[...]
    h2 = jnp.maximum(h2, 0.0)
    # dropout(p=0.2): identity in eval mode

    out = jnp.dot(h2.astype(w3_ref.dtype), w3_ref[...],
                  preferred_element_type=jnp.float32) + b3_ref[...]
    o_ref[...] = out.astype(o_ref.dtype)


@functools.partial(jax.jit, static_argnames=("tile_b",))
def mlp_forward(x, w1, b1, w2, b2, w3, b3, *, tile_b=1024):
    """x: (B, d_in) f32; weights stored as (fan_in, fan_out); biases as (1, fan_out)."""
    B, d_in = x.shape
    d_out = w3.shape[1]
    compute_dtype = jnp.bfloat16

    # --- batch tile selection (no padding of x; ragged tail handled by Pallas) ---
    tb = min(tile_b, _round_up(B, SUBLANE))
    if B >= 512:
        # keep >=2 grid steps so v7x's two TensorCores both get work,
        # while each step still has >=256 rows of MXU work.
        tb = min(tb, _round_up(-(-B // 2), SUBLANE))
    grid_b = pl.cdiv(B, tb)

    # --- lane-dense output: pad d_out up to a full 128-lane width ---
    d_out_pad = _round_up(d_out, LANE)
    if d_out_pad != d_out:
        w3 = jnp.pad(w3, ((0, 0), (0, d_out_pad - d_out)))
        b3 = jnp.pad(b3, ((0, 0), (0, d_out_pad - d_out)))

    # --- bf16 MXU weights, f32 accumulation; biases stay f32; x cast in-kernel ---
    w1 = w1.astype(compute_dtype)
    w2 = w2.astype(compute_dtype)
    w3 = w3.astype(compute_dtype)

    full = lambda shape: pl.BlockSpec(shape, lambda i: (0, 0))  # weights resident

    out = pl.pallas_call(
        _mlp_kernel,
        out_shape=jax.ShapeDtypeStruct((B, d_out_pad), jnp.float32),
        grid_spec=pltpu.PrefetchScalarGridSpec(
            num_scalar_prefetch=0,
            grid=(grid_b,),
            in_specs=[
                pl.BlockSpec((tb, d_in), lambda i: (i, 0)),   # x tile (f32)
                full((d_in, HIDDEN)),                         # W1 (bf16)
                full((1, HIDDEN)),                            # b1 (f32)
                full((HIDDEN, HIDDEN)),                       # W2 (bf16)
                full((1, HIDDEN)),                            # b2 (f32)
                full((HIDDEN, d_out_pad)),                    # W3 (bf16, lane-padded)
                full((1, d_out_pad)),                         # b3 (f32, lane-padded)
            ],
            out_specs=pl.BlockSpec((tb, d_out_pad), lambda i: (i, 0)),
        ),
        compiler_params=pltpu.CompilerParams(
            dimension_semantics=("parallel",),
        ),
    )(x, w1, b1, w2, b2, w3, b3)

    # Strip only the lane padding (batch is never padded).
    if d_out_pad != d_out:
        out = out[:, :d_out]
    return out


def init_linear(key, fan_in, fan_out):
    # Deterministic PyTorch-style uniform(-1/sqrt(fan_in), 1/sqrt(fan_in)) init.
    kw, kb = jax.random.split(key)
    bound = 1.0 / jnp.sqrt(float(fan_in))
    w = jax.random.uniform(kw, (fan_in, fan_out), jnp.float32, -bound, bound)
    b = jax.random.uniform(kb, (1, fan_out), jnp.float32, -bound, bound)
    return w, b


def reference_forward(x, w1, b1, w2, b2, w3, b3):
    # Same bf16-operand / f32-accumulate recipe as the kernel (eval-mode dropout = id).
    bf = jnp.bfloat16
    h1 = jnp.maximum(
        jnp.dot(x.astype(bf), w1.astype(bf), preferred_element_type=jnp.float32) + b1, 0.0)
    h2 = jnp.maximum(
        jnp.dot(h1.astype(bf), w2.astype(bf), preferred_element_type=jnp.float32) + b2, 0.0)
    return jnp.dot(h2.astype(bf), w3.astype(bf), preferred_element_type=jnp.float32) + b3


if __name__ == "__main__":
    key = jax.random.PRNGKey(0)
    k_x, k_x2, k1, k2, k3 = jax.random.split(key, 5)

    d_in, d_out = 32, 10
    w1, b1 = init_linear(k1, d_in, HIDDEN)
    w2, b2 = init_linear(k2, HIDDEN, HIDDEN)
    w3, b3 = init_linear(k3, HIDDEN, d_out)

    # Case 1: small aligned batch.
    batch = 16
    x = jax.random.normal(k_x, (batch, d_in), jnp.float32)
    out = jax.block_until_ready(mlp_forward(x, w1, b1, w2, b2, w3, b3))
    ref = reference_forward(x, w1, b1, w2, b2, w3, b3)
    assert out.shape == (batch, d_out)
    assert jnp.allclose(out, ref, atol=1e-2, rtol=1e-2), "mismatch vs reference (B=16)"

    # Case 2: ragged batch (exercises the pl.cdiv partial-block path, no padding).
    batch2 = 20
    x2 = jax.random.normal(k_x2, (batch2, d_in), jnp.float32)
    out2 = jax.block_until_ready(mlp_forward(x2, w1, b1, w2, b2, w3, b3))
    ref2 = reference_forward(x2, w1, b1, w2, b2, w3, b3)
    assert out2.shape == (batch2, d_out)
    assert jnp.allclose(out2, ref2, atol=1e-2, rtol=1e-2), "mismatch vs reference (B=20)"

    print("KERNEL_OK")
</pallas_src>

<mosaic_0001>
module attributes {stable_mosaic.version = 11 : i64} {
  func.func @_mlp_kernel(%arg0: i32, %arg1: memref<16x32xf32, #tpu.memory_space<vmem>>, %arg2: memref<32x512xbf16, #tpu.memory_space<vmem>>, %arg3: memref<1x512xf32, #tpu.memory_space<vmem>>, %arg4: memref<512x512xbf16, #tpu.memory_space<vmem>>, %arg5: memref<1x512xf32, #tpu.memory_space<vmem>>, %arg6: memref<512x128xbf16, #tpu.memory_space<vmem>>, %arg7: memref<1x128xf32, #tpu.memory_space<vmem>>, %arg8: memref<16x128xf32, #tpu.memory_space<vmem>>) attributes {dimension_semantics = [#tpu.dimension_semantics<parallel>], iteration_bounds = array<i64: 1>, scalar_prefetch = 0 : i64, scratch_operands = 0 : i64, tpu.core_type = #tpu.core_type<tc>, window_params = [{transform_indices = @transform_0, window_bounds = array<i64: 16, 32>}, {pipeline_mode = #tpu.pipeline_mode<synchronous>, transform_indices = @transform_1, window_bounds = array<i64: 32, 512>}, {pipeline_mode = #tpu.pipeline_mode<synchronous>, transform_indices = @transform_2, window_bounds = array<i64: 1, 512>}, {pipeline_mode = #tpu.pipeline_mode<synchronous>, transform_indices = @transform_3, window_bounds = array<i64: 512, 512>}, {pipeline_mode = #tpu.pipeline_mode<synchronous>, transform_indices = @transform_4, window_bounds = array<i64: 1, 512>}, {pipeline_mode = #tpu.pipeline_mode<synchronous>, transform_indices = @transform_5, window_bounds = array<i64: 512, 128>}, {pipeline_mode = #tpu.pipeline_mode<synchronous>, transform_indices = @transform_6, window_bounds = array<i64: 1, 128>}, {transform_indices = @transform_7, window_bounds = array<i64: 16, 128>}]} {
    %c0 = arith.constant 0 : index
    %c0_0 = arith.constant 0 : index
    %0 = vector.load %arg1[%c0, %c0_0] : memref<16x32xf32, #tpu.memory_space<vmem>>, vector<16x32xf32>
    %1 = arith.truncf %0 : vector<16x32xf32> to vector<16x32xbf16>
    %c0_1 = arith.constant 0 : index
    %c0_2 = arith.constant 0 : index
    %2 = vector.load %arg2[%c0_1, %c0_2] : memref<32x512xbf16, #tpu.memory_space<vmem>>, vector<32x512xbf16>
    %cst = arith.constant dense<0.000000e+00> : vector<16x512xf32>
    %3 = tpu.matmul %1, %2, %cst {dimension_numbers = #tpu.dot_dimension_numbers<[1], [0], [0], [1], [0, 0, 1, 1], [], []>} : vector<16x32xbf16>, vector<32x512xbf16>, vector<16x512xf32> -> vector<16x512xf32>
    %c0_3 = arith.constant 0 : index
    %c0_4 = arith.constant 0 : index
    %4 = vector.load %arg3[%c0_3, %c0_4] : memref<1x512xf32, #tpu.memory_space<vmem>>, vector<1x512xf32>
    %5 = vector.broadcast %4 : vector<1x512xf32> to vector<16x512xf32>
    %6 = arith.addf %3, %5 : vector<16x512xf32>
    %cst_5 = arith.constant 0.000000e+00 : f32
    %7 = vector.broadcast %cst_5 : f32 to vector<16x512xf32>
    %8 = arith.maximumf %6, %7 : vector<16x512xf32>
    %9 = arith.truncf %8 : vector<16x512xf32> to vector<16x512xbf16>
    %c0_6 = arith.constant 0 : index
    %c0_7 = arith.constant 0 : index
    %10 = vector.load %arg4[%c0_6, %c0_7] : memref<512x512xbf16, #tpu.memory_space<vmem>>, vector<512x512xbf16>
    %cst_8 = arith.constant dense<0.000000e+00> : vector<16x512xf32>
    %11 = tpu.matmul %9, %10, %cst_8 {dimension_numbers = #tpu.dot_dimension_numbers<[1], [0], [0], [1], [0, 0, 1, 1], [], []>} : vector<16x512xbf16>, vector<512x512xbf16>, vector<16x512xf32> -> vector<16x512xf32>
    %c0_9 = arith.constant 0 : index
    %c0_10 = arith.constant 0 : index
    %12 = vector.load %arg5[%c0_9, %c0_10] : memref<1x512xf32, #tpu.memory_space<vmem>>, vector<1x512xf32>
    %13 = vector.broadcast %12 : vector<1x512xf32> to vector<16x512xf32>
    %14 = arith.addf %11, %13 : vector<16x512xf32>
    %cst_11 = arith.constant 0.000000e+00 : f32
    %15 = vector.broadcast %cst_11 : f32 to vector<16x512xf32>
    %16 = arith.maximumf %14, %15 : vector<16x512xf32>
    %17 = arith.truncf %16 : vector<16x512xf32> to vector<16x512xbf16>
    %c0_12 = arith.constant 0 : index
    %c0_13 = arith.constant 0 : index
    %18 = vector.load %arg6[%c0_12, %c0_13] : memref<512x128xbf16, #tpu.memory_space<vmem>>, vector<512x128xbf16>
    %cst_14 = arith.constant dense<0.000000e+00> : vector<16x128xf32>
    %19 = tpu.matmul %17, %18, %cst_14 {dimension_numbers = #tpu.dot_dimension_numbers<[1], [0], [0], [1], [0, 0, 1, 1], [], []>} : vector<16x512xbf16>, vector<512x128xbf16>, vector<16x128xf32> -> vector<16x128xf32>
    %c0_15 = arith.constant 0 : index
    %c0_16 = arith.constant 0 : index
    %20 = vector.load %arg7[%c0_15, %c0_16] : memref<1x128xf32, #tpu.memory_space<vmem>>, vector<1x128xf32>
    %21 = vector.broadcast %20 : vector<1x128xf32> to vector<16x128xf32>
    %22 = arith.addf %19, %21 : vector<16x128xf32>
    %c0_17 = arith.constant 0 : index
    %c0_18 = arith.constant 0 : index
    %23 = vector.load %arg8[%c0_17, %c0_18] : memref<16x128xf32, #tpu.memory_space<vmem>>, vector<16x128xf32>
    tpu.vector_store %arg8[%c0_17, %c0_18], %22 {strides = array<i32>} : memref<16x128xf32, #tpu.memory_space<vmem>>, vector<16x128xf32>,
    return
  }
  func.func @transform_0(%arg0: i32) -> (i32, i32) {
    %c0_i32 = arith.constant 0 : i32
    %c0_i32_0 = arith.constant 0 : i32
    return %arg0, %c0_i32 : i32, i32
  }
  func.func @transform_1(%arg0: i32) -> (i32, i32) {
    %c0_i32 = arith.constant 0 : i32
    %c0_i32_0 = arith.constant 0 : i32
    %c0_i32_1 = arith.constant 0 : i32
    return %c0_i32, %c0_i32_0 : i32, i32
  }
  func.func @transform_2(%arg0: i32) -> (i32, i32) {
    %c0_i32 = arith.constant 0 : i32
    %c0_i32_0 = arith.constant 0 : i32
    %c0_i32_1 = arith.constant 0 : i32
    return %c0_i32, %c0_i32_0 : i32, i32
  }
  func.func @transform_3(%arg0: i32) -> (i32, i32) {
    %c0_i32 = arith.constant 0 : i32
    %c0_i32_0 = arith.constant 0 : i32
    %c0_i32_1 = arith.constant 0 : i32
    return %c0_i32, %c0_i32_0 : i32, i32
  }
  func.func @transform_4(%arg0: i32) -> (i32, i32) {
    %c0_i32 = arith.constant 0 : i32
    %c0_i32_0 = arith.constant 0 : i32
    %c0_i32_1 = arith.constant 0 : i32
    return %c0_i32, %c0_i32_0 : i32, i32
  }
  func.func @transform_5(%arg0: i32) -> (i32, i32) {
    %c0_i32 = arith.constant 0 : i32
    %c0_i32_0 = arith.constant 0 : i32
    %c0_i32_1 = arith.constant 0 : i32
    return %c0_i32, %c0_i32_0 : i32, i32
  }
  func.func @transform_6(%arg0: i32) -> (i32, i32) {
    %c0_i32 = arith.constant 0 : i32
    %c0_i32_0 = arith.constant 0 : i32
    %c0_i32_1 = arith.constant 0 : i32
    return %c0_i32, %c0_i32_0 : i32, i32
  }
  func.func @transform_7(%arg0: i32) -> (i32, i32) {
    %c0_i32 = arith.constant 0 : i32
    %c0_i32_0 = arith.constant 0 : i32
    return %arg0, %c0_i32 : i32, i32
  }
}

</mosaic_0001>

<bundles_post_ra>
// kernel: mlp_forward.1
= control target key start
LH: loop header
LB: loop body
LE: loop exit
PB: predicated region body
PF: predicated region fallthrough
CT: control target
= control target key end

     0   :  { %vm89_vm0 = vcmask 261120   ;;  %s3392_s0 = inlined_call_operand.vmem [shape: f32[16,32], index: 0, kind: input, shape index: {}]   ;;  %s3393_s1 = inlined_call_operand.vmem [shape: bf16[32,512], index: 1, kind: input, shape index: {}]   ;;  %s3394_s2 = inlined_call_operand.vmem [shape: f32[1,512], index: 2, kind: input, shape index: {}]   ;;  %s3395_s3 = inlined_call_operand.vmem [shape: bf16[512,512], index: 3, kind: input, shape index: {}]   ;;  %s3396_s4 = inlined_call_operand.vmem [shape: f32[1,512], index: 4, kind: input, shape index: {}]   ;;  %s3397_s5 = inlined_call_operand.vmem [shape: bf16[512,128], index: 5, kind: input, shape index: {}]   ;;  %s3398_s6 = inlined_call_operand.vmem [shape: f32[1,128], index: 6, kind: input, shape index: {}]   ;;  %s3399_s7 = inlined_call_operand.hbm [shape: f32[16,128], index: 7, kind: output, shape index: {}]  }
   0x1   :  { %v1529_v0 = vld [vmem:[%s3393_s1 + $0x20] sm:$0xf]  ;;  %v2193_v1 = vld [vmem:[%s3393_s1 + $0x2c] sm:$0xf0]  ;;  %v2191_v2 = vld [vmem:[%s3393_s1 + $0x24] sm:$0xf] }
   0x2   :  { %v1530_v3 = vor.u32 %v2193_v1, %v1529_v0  ;;  %v1531_v4 = vld [vmem:[%s3393_s1 + $0x30] sm:$0xf0]  ;;  %v1537_v5 = vld [vmem:[%s3393_s1 + $0x28] sm:$0xf]  ;;  %v2194_v6 = vld [vmem:[%s3393_s1 + $0x34] sm:$0xf0] }
   0x3   :  { %v1534_v7 = vor.u32 %v2191_v2, %v1531_v4  ;;  %v1538_v8 = vor.u32 %v2194_v6, %v1537_v5  ;;  %v2192_v9 = vld [vmem:[%s3393_s1 + $0x2c] sm:$0xf]  ;;  %v1539_v10 = vld [vmem:[%s3393_s1 + $0x38] sm:$0xf0]  ;;  %v1513_v11 = vld [vmem:[%s3393_s1] sm:$0xf] }
   0x4   :  { %99 = vmatpush.bf16.msra.mxu0 %v1530_v3  ;;  %v1542_v12 = vor.u32 %v2192_v9, %v1539_v10  ;;  %v2189_v13 = vld [vmem:[%s3393_s1 + $0xc] sm:$0xf0]  ;;  %v2187_v14 = vld [vmem:[%s3393_s1 + $0x4] sm:$0xf]  ;;  %v1515_v15 = vld [vmem:[%s3393_s1 + $0x10] sm:$0xf0] }
   0x5   :  { %113 = vmatpush.bf16.msra.mxu1 %v1534_v7  ;;  %127 = vmatpush.bf16.msra.mxu2 %v1538_v8  ;;  %v1514_v16 = vor.u32 %v2189_v13, %v1513_v11  ;;  %v1518_v17 = vor.u32 %v2187_v14, %v1515_v15  ;;  %v1521_v18 = vld [vmem:[%s3393_s1 + $0x8] sm:$0xf]  ;;  %v2190_v19 = vld [vmem:[%s3393_s1 + $0x14] sm:$0xf0]  ;;  %v2188_v20 = vld [vmem:[%s3393_s1 + $0xc] sm:$0xf] }
   0x6   :  { %141 = vmatpush.bf16.msra.mxu3 %v1542_v12  ;;  %v1522_v21 = vor.u32 %v2190_v19, %v1521_v18  ;;  %v1523_v22 = vld [vmem:[%s3393_s1 + $0x18] sm:$0xf0]  ;;  %v28_v23 = vld [vmem:[%s3392_s0] sm:$0xff]  ;;  %v29_v24 = vld [vmem:[%s3392_s0 + $0x8] sm:$0xff] }
   0x7   :  { %v1526_v25 = vor.u32 %v2188_v20, %v1523_v22  ;;  %v30_v26 = vpack.c.bf16 %v29_v24, %v28_v23  ;;  %v1661_v27 = vld [vmem:[%s3395_s3 + $0xe0] sm:$0xf]  ;;  %v2225_v28 = vld [vmem:[%s3395_s3 + $0xec] sm:$0xf0] }
   0x8   :  { %v1789_v29 = vld [vmem:[%s3395_s3 + $0x1e0] sm:$0xf]  ;;  %100 = vmatpush.bf16.msra.mxu0 %v1514_v16  ;;  %v1662_v30 = vor.u32 %v2225_v28, %v1661_v27  ;;  %v2257_v31 = vld [vmem:[%s3395_s3 + $0x1ec] sm:$0xf0] }
   0x9   :  { %v1645_v32 = vld [vmem:[%s3395_s3 + $0xc0] sm:$0xf]  ;;  %v2221_v33 = vld [vmem:[%s3395_s3 + $0xcc] sm:$0xf0]  ;;  %114 = vmatpush.bf16.msra.mxu1 %v1518_v17  ;;  %128 = vmatpush.bf16.msra.mxu2 %v1522_v21  ;;  %v1790_v34 = vor.u32 %v2257_v31, %v1789_v29 }
   0xa   :  { %v1773_v35 = vld [vmem:[%s3395_s3 + $0x1c0] sm:$0xf]  ;;  %v2253_v36 = vld [vmem:[%s3395_s3 + $0x1cc] sm:$0xf0]  ;;  %142 = vmatpush.bf16.msra.mxu3 %v1526_v25  ;;  %v1646_v38 = vor.u32 %v2221_v33, %v1645_v32 }
   0xb   :  { %v1917_v37 = vld [vmem:[%s3395_s3 + $0x2e0] sm:$0xf]  ;;  %v2289_v39 = vld [vmem:[%s3395_s3 + $0x2ec] sm:$0xf0]  ;;  %1543 = vmatmul.msk.bf16.vlgmr.msra.gmra.mxu0 %vm89_vm0, %v30_v26  ;;  %v1774_v42 = vor.u32 %v2253_v36, %v1773_v35 }
   0xc   :  { %939 = vmatpush.bf16.msrb.mxu0 %v1662_v30  ;;  %v2045_v40 = vld [vmem:[%s3395_s3 + $0x3e0] sm:$0xf]  ;;  %v2321_v41 = vld [vmem:[%s3395_s3 + $0x3ec] sm:$0xf0]  ;;  %v1918_v43 = vor.u32 %v2289_v39, %v1917_v37  ;;  %1544 = vmatmul.msk.bf16.vlgmr.msra.gmra.mxu1 %vm89_vm0, %v30_v26 }
   0xd   :  { %953 = vmatpush.bf16.msrb.mxu1 %v1790_v34  ;;  %v2046_v44 = vor.u32 %v2321_v41, %v2045_v40  ;;  %v1629_v45 = vld [vmem:[%s3395_s3 + $0xa0] sm:$0xf]  ;;  %v2217_v46 = vld [vmem:[%s3395_s3 + $0xac] sm:$0xf0]  ;;  %1545 = vmatmul.msk.bf16.vlgmr.msra.gmra.mxu2 %vm89_vm0, %v30_v26 }
   0xe   :  { %v1757_v47 = vld [vmem:[%s3395_s3 + $0x1a0] sm:$0xf]  ;;  %v2249_v48 = vld [vmem:[%s3395_s3 + $0x1ac] sm:$0xf0]  ;;  %1546 = vmatmul.msk.bf16.vlgmr.msra.gmra.mxu3 %vm89_vm0, %v30_v26  ;;  %967 = vmatpush.bf16.msrb.mxu2 %v1918_v43  ;;  %v1630_v54 = vor.u32 %v2217_v46, %v1629_v45 }
   0xf   :  { %v1901_v49 = vld [vmem:[%s3395_s3 + $0x2c0] sm:$0xf]  ;;  %v2285_v50 = vld [vmem:[%s3395_s3 + $0x2cc] sm:$0xf0]  ;;  %981 = vmatpush.bf16.msrb.mxu3 %v2046_v44  ;;  %v1758_v58 = vor.u32 %v2249_v48, %v1757_v47 }
  0x10   :  { %v1902_v51 = vor.u32 %v2285_v50, %v1901_v49  ;;  %v2029_v52 = vld [vmem:[%s3395_s3 + $0x3c0] sm:$0xf]  ;;  %v2317_v53 = vld [vmem:[%s3395_s3 + $0x3cc] sm:$0xf0]  ;;  %940 = vmatpush.bf16.msrb.mxu0 %v1646_v38  ;;  %v2223_v49 = vld [vmem:[%s3395_s3 + $0xe4] sm:$0xf] }
  0x11   :  { %v2030_v55 = vor.u32 %v2317_v53, %v2029_v52  ;;  %v1613_v56 = vld [vmem:[%s3395_s3 + $0x80] sm:$0xf]  ;;  %v2213_v57 = vld [vmem:[%s3395_s3 + $0x8c] sm:$0xf0]  ;;  %954 = vmatpush.bf16.msrb.mxu1 %v1774_v42  ;;  %v1663_v50 = vld [vmem:[%s3395_s3 + $0xf0] sm:$0xf0] }
  0x12   :  { %v1885_v59 = vld [vmem:[%s3395_s3 + $0x2a0] sm:$0xf]  ;;  %v2281_v60 = vld [vmem:[%s3395_s3 + $0x2ac] sm:$0xf0]  ;;  %968 = vmatpush.bf16.msrb.mxu2 %v1902_v51  ;;  %v1614_v2 = vor.u32 %v2213_v57, %v1613_v56  ;;  %v2255_v51 = vld [vmem:[%s3395_s3 + $0x1e4] sm:$0xf] }
  0x13   :  { %v2013_v61 = vld [vmem:[%s3395_s3 + $0x3a0] sm:$0xf]  ;;  %v2245_v63 = vld [vmem:[%s3395_s3 + $0x18c] sm:$0xf0]  ;;  %v1886_v1 = vor.u32 %v2281_v60, %v1885_v59  ;;  %982 = vmatpush.bf16.msrb.mxu3 %v2030_v55  ;;  %v1791_v52 = vld [vmem:[%s3395_s3 + $0x1f0] sm:$0xf0] }
  0x14   :  { %v1741_v62 = vld [vmem:[%s3395_s3 + $0x180] sm:$0xf]  ;;  %v2313_v0 = vld [vmem:[%s3395_s3 + $0x3ac] sm:$0xf0]  ;;  %941 = vmatpush.bf16.msrb.mxu0 %v1630_v54  ;;  %v2219_v56 = vld [vmem:[%s3395_s3 + $0xc4] sm:$0xf] }
  0x15   :  { %v2014_v3 = vor.u32 %v2313_v0, %v2013_v61  ;;  %v1597_v4 = vld [vmem:[%s3395_s3 + $0x60] sm:$0xf]  ;;  %v2277_v6 = vld [vmem:[%s3395_s3 + $0x28c] sm:$0xf0]  ;;  %955 = vmatpush.bf16.msrb.mxu1 %v1758_v58  ;;  %v1742_v7 = vor.u32 %v2245_v63, %v1741_v62  ;;  %v1647_v57 = vld [vmem:[%s3395_s3 + $0xd0] sm:$0xf0]  ;;  %v1666_v62 = vor.u32 %v2223_v49, %v1663_v50 }
  0x16   :  { %v1869_v5 = vld [vmem:[%s3395_s3 + $0x280] sm:$0xf]  ;;  %v2209_v8 = vld [vmem:[%s3395_s3 + $0x6c] sm:$0xf0]  ;;  %969 = vmatpush.bf16.msrb.mxu2 %v1886_v1  ;;  %v2287_v0 = vld [vmem:[%s3395_s3 + $0x2e4] sm:$0xf] }
  0x17   :  { %v1997_v9 = vld [vmem:[%s3395_s3 + $0x380] sm:$0xf]  ;;  %v2309_v10 = vld [vmem:[%s3395_s3 + $0x38c] sm:$0xf0]  ;;  %v1870_v13 = vor.u32 %v2277_v6, %v1869_v5  ;;  %983 = vmatpush.bf16.msrb.mxu3 %v2014_v3  ;;  %v1598_v14 = vor.u32 %v2209_v8, %v1597_v4  ;;  %v1919_v1 = vld [vmem:[%s3395_s3 + $0x2f0] sm:$0xf0] }
  0x18   :  { %v1725_v11 = vld [vmem:[%s3395_s3 + $0x160] sm:$0xf]  ;;  %v2241_v12 = vld [vmem:[%s3395_s3 + $0x16c] sm:$0xf0]  ;;  %942 = vmatpush.bf16.msrb.mxu0 %v1614_v2  ;;  %v1998_v15 = vor.u32 %v2309_v10, %v1997_v9  ;;  %v1794_v2 = vor.u32 %v2255_v51, %v1791_v52  ;;  %v2319_v3 = vld [vmem:[%s3395_s3 + $0x3e4] sm:$0xf] }
  0x19   :  { %v1581_v16 = vld [vmem:[%s3395_s3 + $0x40] sm:$0xf]  ;;  %v2273_v18 = vld [vmem:[%s3395_s3 + $0x26c] sm:$0xf0]  ;;  %956 = vmatpush.bf16.msrb.mxu1 %v1742_v7  ;;  %v1726_v19 = vor.u32 %v2241_v12, %v1725_v11  ;;  %v2047_v4 = vld [vmem:[%s3395_s3 + $0x3f0] sm:$0xf0] }
  0x1a   :  { %v1853_v17 = vld [vmem:[%s3395_s3 + $0x260] sm:$0xf]  ;;  %v2205_v20 = vld [vmem:[%s3395_s3 + $0x4c] sm:$0xf0]  ;;  %970 = vmatpush.bf16.msrb.mxu2 %v1870_v13  ;;  %v2251_v5 = vld [vmem:[%s3395_s3 + $0x1c4] sm:$0xf] }
  0x1b   :  { %v1981_v21 = vld [vmem:[%s3395_s3 + $0x360] sm:$0xf]  ;;  %v2305_v22 = vld [vmem:[%s3395_s3 + $0x36c] sm:$0xf0]  ;;  %v1854_v25 = vor.u32 %v2273_v18, %v1853_v17  ;;  %984 = vmatpush.bf16.msrb.mxu3 %v1998_v15  ;;  %v1582_v26 = vor.u32 %v2205_v20, %v1581_v16  ;;  %v1775_v6 = vld [vmem:[%s3395_s3 + $0x1d0] sm:$0xf0] }
  0x1c   :  { %v1709_v23 = vld [vmem:[%s3395_s3 + $0x140] sm:$0xf]  ;;  %v2237_v24 = vld [vmem:[%s3395_s3 + $0x14c] sm:$0xf0]  ;;  %943 = vmatpush.bf16.msrb.mxu0 %v1598_v14  ;;  %v1982_v27 = vor.u32 %v2305_v22, %v1981_v21 }
  0x1d   :  { %v1565_v28 = vld [vmem:[%s3395_s3 + $0x20] sm:$0xf]  ;;  %v2269_v30 = vld [vmem:[%s3395_s3 + $0x24c] sm:$0xf0]  ;;  %957 = vmatpush.bf16.msrb.mxu1 %v1726_v19  ;;  %v1710_v31 = vor.u32 %v2237_v24, %v1709_v23 }
  0x1e   :  { %v1837_v29 = vld [vmem:[%s3395_s3 + $0x240] sm:$0xf]  ;;  %v2201_v32 = vld [vmem:[%s3395_s3 + $0x2c] sm:$0xf0]  ;;  %971 = vmatpush.bf16.msrb.mxu2 %v1854_v25 }
  0x1f   :  { %v1965_v33 = vld [vmem:[%s3395_s3 + $0x340] sm:$0xf]  ;;  %v2301_v34 = vld [vmem:[%s3395_s3 + $0x34c] sm:$0xf0]  ;;  %v1838_v37 = vor.u32 %v2269_v30, %v1837_v29  ;;  %985 = vmatpush.bf16.msrb.mxu3 %v1982_v27  ;;  %v1566_v39 = vor.u32 %v2201_v32, %v1565_v28 }
  0x20   :  { %v1693_v35 = vld [vmem:[%s3395_s3 + $0x120] sm:$0xf]  ;;  %v2233_v36 = vld [vmem:[%s3395_s3 + $0x12c] sm:$0xf0]  ;;  %944 = vmatpush.bf16.msrb.mxu0 %v1582_v26  ;;  %v1966_v40 = vor.u32 %v2301_v34, %v1965_v33 }
  0x21   :  { %v1549_v38 = vld [vmem:[%s3395_s3] sm:$0xf]  ;;  %v2197_v41 = vld [vmem:[%s3395_s3 + $0xc] sm:$0xf0]  ;;  %958 = vmatpush.bf16.msrb.mxu1 %v1710_v31  ;;  %v1694_v44 = vor.u32 %v2233_v36, %v1693_v35 }
  0x22   :  { %v1821_v42 = vld [vmem:[%s3395_s3 + $0x220] sm:$0xf]  ;;  %v2265_v43 = vld [vmem:[%s3395_s3 + $0x22c] sm:$0xf0]  ;;  %972 = vmatpush.bf16.msrb.mxu2 %v1838_v37  ;;  %v1550_v54 = vor.u32 %v2197_v41, %v1549_v38 }
  0x23   :  { %v1677_v45 = vld [vmem:[%s3395_s3 + $0x100] sm:$0xf]  ;;  %v2297_v47 = vld [vmem:[%s3395_s3 + $0x32c] sm:$0xf0]  ;;  %v1822_v53 = vor.u32 %v2265_v43, %v1821_v42  ;;  %986 = vmatpush.bf16.msrb.mxu3 %v1966_v40 }
  0x24   :  { %v1949_v46 = vld [vmem:[%s3395_s3 + $0x320] sm:$0xf]  ;;  %v2229_v48 = vld [vmem:[%s3395_s3 + $0x10c] sm:$0xf0]  ;;  %945 = vmatpush.bf16.msrb.mxu0 %v1566_v39 }
  0x25   :  { %v1950_v55 = vor.u32 %v2297_v47, %v1949_v46  ;;  %v1805_v58 = vld [vmem:[%s3395_s3 + $0x200] sm:$0xf]  ;;  %v2261_v59 = vld [vmem:[%s3395_s3 + $0x20c] sm:$0xf0]  ;;  %959 = vmatpush.bf16.msrb.mxu1 %v1694_v44  ;;  %v1678_v61 = vor.u32 %v2229_v48, %v1677_v45 }
  0x26   :  { %v1933_v60 = vld [vmem:[%s3395_s3 + $0x300] sm:$0xf]  ;;  %v2293_v63 = vld [vmem:[%s3395_s3 + $0x30c] sm:$0xf0]  ;;  %973 = vmatpush.bf16.msrb.mxu2 %v1822_v53  ;;  %v1806_v7 = vor.u32 %v2261_v59, %v1805_v58 }
  0x27   :  { %12 = vsyncpa [#allocation3], 0  ;;  %987 = vmatpush.bf16.msrb.mxu3 %v1950_v55  ;;  %v1934_v8 = vor.u32 %v2293_v63, %v1933_v60  ;;  %v1922_v9 = vor.u32 %v2287_v0, %v1919_v1  ;;  %v1650_v10 = vor.u32 %v2219_v56, %v1647_v57  ;;  %v2050_v11 = vor.u32 %v2319_v3, %v2047_v4  ;;  %v2215_v12 = vld [vmem:[%s3395_s3 + $0xa4] sm:$0xf]  ;;  %v1903_v14 = vld [vmem:[%s3395_s3 + $0x2d0] sm:$0xf0] }
  0x28   :  { %946 = vmatpush.bf16.msrb.mxu0 %v1550_v54  ;;  %v2283_v13 = vld [vmem:[%s3395_s3 + $0x2c4] sm:$0xf]  ;;  %v1778_v15 = vor.u32 %v2251_v5, %v1775_v6  ;;  %v1631_v16 = vld [vmem:[%s3395_s3 + $0xb0] sm:$0xf0]  ;;  %s2385_s26 = smov [#allocation2]   ;;  %s1499_s29 = sshll.u32 %s3399_s7, 4  ;;  %s1500_s29 = int_to_ptr.hbm [resolvable:$true] %s1499_s29 }
  0x29   :  { %960 = vmatpush.bf16.msrb.mxu1 %v1678_v61  ;;  %v2315_v17 = vld [vmem:[%s3395_s3 + $0x3c4] sm:$0xf]  ;;  %v2031_v18 = vld [vmem:[%s3395_s3 + $0x3d0] sm:$0xf0]  ;;  %v1906_v21 = vor.u32 %v2283_v13, %v1903_v14  ;;  %v1634_v22 = vor.u32 %v2215_v12, %v1631_v16  ;;  %s2387_s30 = smov 8  }
  0x2a   :  { %974 = vmatpush.bf16.msrb.mxu2 %v1806_v7  ;;  %v2247_v19 = vld [vmem:[%s3395_s3 + $0x1a4] sm:$0xf]  ;;  %v1759_v20 = vld [vmem:[%s3395_s3 + $0x1b0] sm:$0xf0]  ;;  %v2034_v23 = vor.u32 %v2315_v17, %v2031_v18 }
  0x2b   :  { %988 = vmatpush.bf16.msrb.mxu3 %v1934_v8  ;;  %v1762_v24 = vor.u32 %v2247_v19, %v1759_v20  ;;  %v2211_v25 = vld [vmem:[%s3395_s3 + $0x84] sm:$0xf]  ;;  %v1615_v26 = vld [vmem:[%s3395_s3 + $0x90] sm:$0xf0] }
  0x2c   :  { %995 = vmatpush.bf16.msra.mxu0 %v1666_v62  ;;  %v2243_v27 = vld [vmem:[%s3395_s3 + $0x184] sm:$0xf]  ;;  %v1743_v28 = vld [vmem:[%s3395_s3 + $0x190] sm:$0xf0]  ;;  %v1618_v29 = vor.u32 %v2211_v25, %v1615_v26 }
  0x2d   :  { %1009 = vmatpush.bf16.msra.mxu1 %v1794_v2  ;;  %v1746_v30 = vor.u32 %v2243_v27, %v1743_v28  ;;  %v2279_v31 = vld [vmem:[%s3395_s3 + $0x2a4] sm:$0xf]  ;;  %v1887_v32 = vld [vmem:[%s3395_s3 + $0x2b0] sm:$0xf0]  ;;  %v39_v27 = vld [vmem:[%s3394_s2] sm:$0xf] }
  0x2e   :  { %1023 = vmatpush.bf16.msra.mxu2 %v1922_v9  ;;  %v2311_v33 = vld [vmem:[%s3395_s3 + $0x3a4] sm:$0xf]  ;;  %v1890_v34 = vor.u32 %v2279_v31, %v1887_v32  ;;  %v2015_v35 = vld [vmem:[%s3395_s3 + $0x3b0] sm:$0xf0]  ;;  %v42_v31 = vperm.slane %v39_v27, 1 }
  0x2f   :  { %1037 = vmatpush.bf16.msra.mxu3 %v2050_v11  ;;  %v2018_v36 = vor.u32 %v2311_v33, %v2015_v35  ;;  %v2207_v37 = vld [vmem:[%s3395_s3 + $0x64] sm:$0xf]  ;;  %v1599_v38 = vld [vmem:[%s3395_s3 + $0x70] sm:$0xf0] }
  0x30   :  { %996 = vmatpush.bf16.msra.mxu0 %v1650_v10  ;;  %v2239_v39 = vld [vmem:[%s3395_s3 + $0x164] sm:$0xf]  ;;  %v1602_v40 = vor.u32 %v2207_v37, %v1599_v38  ;;  %v1727_v41 = vld [vmem:[%s3395_s3 + $0x170] sm:$0xf0] }
  0x31   :  { %1010 = vmatpush.bf16.msra.mxu1 %v1778_v15  ;;  %v1730_v42 = vor.u32 %v2239_v39, %v1727_v41  ;;  %v2275_v43 = vld [vmem:[%s3395_s3 + $0x284] sm:$0xf]  ;;  %v1871_v44 = vld [vmem:[%s3395_s3 + $0x290] sm:$0xf0]  ;;  %v2226_v41 = vld [vmem:[%s3395_s3 + $0xf4] sm:$0xf0] }
  0x32   :  { %1024 = vmatpush.bf16.msra.mxu2 %v1906_v21  ;;  %v1874_v45 = vor.u32 %v2275_v43, %v1871_v44  ;;  %v2307_v46 = vld [vmem:[%s3395_s3 + $0x384] sm:$0xf]  ;;  %v1999_v47 = vld [vmem:[%s3395_s3 + $0x390] sm:$0xf0]  ;;  %v43_v43 = vperm.slane %v39_v27, 2 }
  0x33   :  { %1038 = vmatpush.bf16.msra.mxu3 %v2034_v23  ;;  %v2002_v48 = vor.u32 %v2307_v46, %v1999_v47  ;;  %v2203_v49 = vld [vmem:[%s3395_s3 + $0x44] sm:$0xf]  ;;  %v1583_v50 = vld [vmem:[%s3395_s3 + $0x50] sm:$0xf0]  ;;  %v2258_v46 = vld [vmem:[%s3395_s3 + $0x1f4] sm:$0xf0] }
  0x34   :  { %997 = vmatpush.bf16.msra.mxu0 %v1634_v22  ;;  %v2235_v51 = vld [vmem:[%s3395_s3 + $0x144] sm:$0xf]  ;;  %v1586_v52 = vor.u32 %v2203_v49, %v1583_v50  ;;  %v1711_v53 = vld [vmem:[%s3395_s3 + $0x150] sm:$0xf0]  ;;  %v44_v47 = vperm.slane %v39_v27, 3 }
  0x35   :  { %1011 = vmatpush.bf16.msra.mxu1 %v1762_v24  ;;  %v1714_v54 = vor.u32 %v2235_v51, %v1711_v53  ;;  %v2271_v55 = vld [vmem:[%s3395_s3 + $0x264] sm:$0xf]  ;;  %v1855_v56 = vld [vmem:[%s3395_s3 + $0x270] sm:$0xf0]  ;;  %v1653_v53 = vld [vmem:[%s3395_s3 + $0xc8] sm:$0xf] }
  0x36   :  { %1025 = vmatpush.bf16.msra.mxu2 %v1890_v34  ;;  %v2303_v57 = vld [vmem:[%s3395_s3 + $0x364] sm:$0xf]  ;;  %v1858_v58 = vor.u32 %v2271_v55, %v1855_v56  ;;  %v1983_v59 = vld [vmem:[%s3395_s3 + $0x370] sm:$0xf0] }
  0x37   :  { %1039 = vmatpush.bf16.msra.mxu3 %v2018_v36  ;;  %v1986_v60 = vor.u32 %v2303_v57, %v1983_v59  ;;  %v2199_v61 = vld [vmem:[%s3395_s3 + $0x24] sm:$0xf]  ;;  %v1567_v62 = vld [vmem:[%s3395_s3 + $0x30] sm:$0xf0]  ;;  %v1781_v57 = vld [vmem:[%s3395_s3 + $0x1c8] sm:$0xf] }
  0x38   :  { %998 = vmatpush.bf16.msra.mxu0 %v1618_v29  ;;  %v1570_v63 = vor.u32 %v2199_v61, %v1567_v62  ;;  %v2231_v0 = vld [vmem:[%s3395_s3 + $0x124] sm:$0xf]  ;;  %v1695_v1 = vld [vmem:[%s3395_s3 + $0x130] sm:$0xf0]  ;;  %v41_v29 = vperm.slane %v39_v27, 0 }
  0x39   :  { %1012 = vmatpush.bf16.msra.mxu1 %v1746_v30  ;;  %v1698_v2 = vor.u32 %v2231_v0, %v1695_v1  ;;  %v2267_v3 = vld [vmem:[%s3395_s3 + $0x244] sm:$0xf]  ;;  %v1839_v4 = vld [vmem:[%s3395_s3 + $0x250] sm:$0xf0]  ;;  %v1925_v0 = vld [vmem:[%s3395_s3 + $0x2e8] sm:$0xf] }
  0x3a   :  { %1026 = vmatpush.bf16.msra.mxu2 %v1874_v45  ;;  %v2299_v5 = vld [vmem:[%s3395_s3 + $0x344] sm:$0xf]  ;;  %v1842_v6 = vor.u32 %v2267_v3, %v1839_v4  ;;  %v1967_v7 = vld [vmem:[%s3395_s3 + $0x350] sm:$0xf0]  ;;  %v1797_v45 = vld [vmem:[%s3395_s3 + $0x1e8] sm:$0xf] }
  0x3b   :  { %1040 = vmatpush.bf16.msra.mxu3 %v2002_v48  ;;  %v1970_v8 = vor.u32 %v2299_v5, %v1967_v7  ;;  %v2195_v9 = vld [vmem:[%s3395_s3 + $0x4] sm:$0xf]  ;;  %v1551_v10 = vld [vmem:[%s3395_s3 + $0x10] sm:$0xf0]  ;;  %v2290_v1 = vld [vmem:[%s3395_s3 + $0x2f4] sm:$0xf0] }
  0x3c   :  { %999 = vmatpush.bf16.msra.mxu0 %v1602_v40  ;;  %v2227_v11 = vld [vmem:[%s3395_s3 + $0x104] sm:$0xf]  ;;  %v1554_v12 = vor.u32 %v2195_v9, %v1551_v10  ;;  %v1679_v13 = vld [vmem:[%s3395_s3 + $0x110] sm:$0xf0]  ;;  %v1669_v40 = vld [vmem:[%s3395_s3 + $0xe8] sm:$0xf] }
  0x3d   :  { %1013 = vmatpush.bf16.msra.mxu1 %v1730_v42  ;;  %v1682_v14 = vor.u32 %v2227_v11, %v1679_v13  ;;  %v2263_v15 = vld [vmem:[%s3395_s3 + $0x224] sm:$0xf]  ;;  %v1823_v16 = vld [vmem:[%s3395_s3 + $0x230] sm:$0xf0]  ;;  %v1670_v50 = vor.u32 %v2226_v41, %v1669_v40  ;;  %v2322_v5 = vld [vmem:[%s3395_s3 + $0x3f4] sm:$0xf0] }
  0x3e   :  { %1027 = vmatpush.bf16.msra.mxu2 %v1858_v58  ;;  %v2295_v17 = vld [vmem:[%s3395_s3 + $0x324] sm:$0xf]  ;;  %v1951_v18 = vld [vmem:[%s3395_s3 + $0x330] sm:$0xf0]  ;;  %v1826_v19 = vor.u32 %v2263_v15, %v1823_v16  ;;  %v2254_v58 = vld [vmem:[%s3395_s3 + $0x1d4] sm:$0xf0] }
  0x3f   :  { %1041 = vmatpush.bf16.msra.mxu3 %v1986_v60  ;;  %v1954_v20 = vor.u32 %v2295_v17, %v1951_v18  ;;  %v2259_v21 = vld [vmem:[%s3395_s3 + $0x204] sm:$0xf]  ;;  %v1807_v22 = vld [vmem:[%s3395_s3 + $0x210] sm:$0xf0]  ;;  %v1782_v4 = vor.u32 %v2254_v58, %v1781_v57  ;;  %v2218_v7 = vld [vmem:[%s3395_s3 + $0xb4] sm:$0xf0] }
  0x40   :  { %1000 = vmatpush.bf16.msra.mxu0 %v1586_v52  ;;  %v1810_v23 = vor.u32 %v2259_v21, %v1807_v22  ;;  %v2291_v24 = vld [vmem:[%s3395_s3 + $0x304] sm:$0xf]  ;;  %v1935_v25 = vld [vmem:[%s3395_s3 + $0x310] sm:$0xf0]  ;;  %v1798_v52 = vor.u32 %v2258_v46, %v1797_v45  ;;  %v1765_v10 = vld [vmem:[%s3395_s3 + $0x1a8] sm:$0xf] }
  0x41   :  { %1014 = vmatpush.bf16.msra.mxu1 %v1714_v54  ;;  %v1938_v26 = vor.u32 %v2291_v24, %v1935_v25  ;;  %v2222_v54 = vld [vmem:[%s3395_s3 + $0xd4] sm:$0xf0]  ;;  %v1909_v18 = vld [vmem:[%s3395_s3 + $0x2c8] sm:$0xf] }
  0x42   :  { %1028 = vmatpush.bf16.msra.mxu2 %v1842_v6  ;;  %v1637_v6 = vld [vmem:[%s3395_s3 + $0xa8] sm:$0xf]  ;;  %v2250_v11 = vld [vmem:[%s3395_s3 + $0x1b4] sm:$0xf0] }
  0x43   :  { %1042 = vmatpush.bf16.msra.mxu3 %v1970_v8  ;;  %v1638_v17 = vor.u32 %v2218_v7, %v1637_v6  ;;  %v1766_v22 = vor.u32 %v2250_v11, %v1765_v10  ;;  %v1621_v24 = vld [vmem:[%s3395_s3 + $0x88] sm:$0xf]  ;;  %v2214_v25 = vld [vmem:[%s3395_s3 + $0x94] sm:$0xf0] }
  0x44   :  { %1001 = vmatpush.bf16.msra.mxu0 %v1570_v63  ;;  %v1654_v63 = vor.u32 %v2222_v54, %v1653_v53  ;;  %v2246_v27 = vld [vmem:[%s3395_s3 + $0x194] sm:$0xf0]  ;;  %v2005_v46 = vld [vmem:[%s3395_s3 + $0x388] sm:$0xf] }
  0x45   :  { %1015 = vmatpush.bf16.msra.mxu1 %v1698_v2  ;;  %v2053_v2 = vld [vmem:[%s3395_s3 + $0x3e8] sm:$0xf]  ;;  %v2274_v57 = vld [vmem:[%s3395_s3 + $0x274] sm:$0xf0] }
  0x46   :  { %1029 = vmatpush.bf16.msra.mxu2 %v1826_v19  ;;  %v2054_v16 = vor.u32 %v2322_v5, %v2053_v2  ;;  %v2286_v19 = vld [vmem:[%s3395_s3 + $0x2d4] sm:$0xf0]  ;;  %v1973_v6 = vld [vmem:[%s3395_s3 + $0x348] sm:$0xf] }
  0x47   :  { %1043 = vmatpush.bf16.msra.mxu3 %v1954_v20  ;;  %v2037_v20 = vld [vmem:[%s3395_s3 + $0x3c8] sm:$0xf]  ;;  %v2270_v5 = vld [vmem:[%s3395_s3 + $0x254] sm:$0xf0] }
  0x48   :  { %1002 = vmatpush.bf16.msra.mxu0 %v1554_v12  ;;  %v1557_v10 = vld [vmem:[%s3395_s3 + $0x8] sm:$0xf]  ;;  %v2198_v11 = vld [vmem:[%s3395_s3 + $0x14] sm:$0xf0] }
  0x49   :  { %1016 = vmatpush.bf16.msra.mxu1 %v1682_v14  ;;  %v1926_v14 = vor.u32 %v2290_v1, %v1925_v0  ;;  %v1701_v0 = vld [vmem:[%s3395_s3 + $0x128] sm:$0xf]  ;;  %v2234_v1 = vld [vmem:[%s3395_s3 + $0x134] sm:$0xf0] }
  0x4a   :  { %1030 = vmatpush.bf16.msra.mxu2 %v1810_v23  ;;  %v2318_v23 = vld [vmem:[%s3395_s3 + $0x3d4] sm:$0xf0] }
  0x4b   :  { %1044 = vmatpush.bf16.msra.mxu3 %v1938_v26  ;;  %v1749_v26 = vld [vmem:[%s3395_s3 + $0x188] sm:$0xf] }
  0x88   :  { %v102_v28 = vpop.f32.mrf.mxu0 }
  0x89   :  { %v116_v30 = vpop.f32.mrf.mxu1  ;;  %v103_v32 = vadd.f32 %v102_v28, %v41_v29  ;;  %v1910_v28 = vor.u32 %v2286_v19, %v1909_v18  ;;  %v2256_v18 = vld [vmem:[%s3395_s3 + $0x1ec] sm:$0xf]  ;;  %v1799_v19 = vld [vmem:[%s3395_s3 + $0x1f8] sm:$0xf0] }
  0x8a   :  { %v117_v33 = vadd.f32 %v116_v30, %v42_v31  ;;  %v1622_v30 = vor.u32 %v2214_v25, %v1621_v24  ;;  %v1558_v24 = vor.u32 %v2198_v11, %v1557_v10  ;;  %v2208_v10 = vld [vmem:[%s3395_s3 + $0x6c] sm:$0xf]  ;;  %v1607_v11 = vld [vmem:[%s3395_s3 + $0x78] sm:$0xf0] }
  0x8b   :  { %v149_v37 = vmax.f32 %v103_v32, 0.0  ;;  %v2282_v32 = vld [vmem:[%s3395_s3 + $0x2b4] sm:$0xf0] }
  0x8c   :  { %v150_v42 = vmax.f32 %v117_v33, 0.0  ;;  %v1750_v33 = vor.u32 %v2246_v27, %v1749_v26  ;;  %v1957_v26 = vld [vmem:[%s3395_s3 + $0x328] sm:$0xf]  ;;  %v2298_v27 = vld [vmem:[%s3395_s3 + $0x334] sm:$0xf0] }
  0x90   :  { %v130_v34 = vpop.f32.mrf.mxu2  ;;  %v104_v36 = vpop.f32.mrf.mxu0 }
  0x91   :  { %v144_v35 = vpop.f32.mrf.mxu3  ;;  %v105_v38 = vadd.f32 %v104_v36, %v41_v29  ;;  %v118_v39 = vpop.f32.mrf.mxu1  ;;  %v131_v55 = vadd.f32 %v130_v34, %v43_v43  ;;  %v2038_v29 = vor.u32 %v2318_v23, %v2037_v20  ;;  %v2021_v34 = vld [vmem:[%s3395_s3 + $0x3a8] sm:$0xf]  ;;  %v2266_v23 = vld [vmem:[%s3395_s3 + $0x234] sm:$0xf0] }
  0x92   :  { %v119_v44 = vadd.f32 %v118_v39, %v42_v31  ;;  %v145_v59 = vadd.f32 %v144_v35, %v44_v47  ;;  %v1893_v31 = vld [vmem:[%s3395_s3 + $0x2a8] sm:$0xf]  ;;  %v2314_v35 = vld [vmem:[%s3395_s3 + $0x3b4] sm:$0xf0] }
  0x93   :  { %v153_v48 = vmax.f32 %v105_v38, 0.0  ;;  %v151_v8 = vmax.f32 %v131_v55, 0.0  ;;  %v1605_v36 = vld [vmem:[%s3395_s3 + $0x68] sm:$0xf]  ;;  %v2242_v39 = vld [vmem:[%s3395_s3 + $0x174] sm:$0xf0]  ;;  %v1894_v40 = vor.u32 %v2282_v32, %v1893_v31  ;;  %v2022_v41 = vor.u32 %v2314_v35, %v2021_v34 }
  0x94   :  { %v154_v49 = vmax.f32 %v119_v44, 0.0  ;;  %v152_v12 = vmax.f32 %v145_v59, 0.0  ;;  %v1733_v38 = vld [vmem:[%s3395_s3 + $0x168] sm:$0xf]  ;;  %v1655_v32 = vld [vmem:[%s3395_s3 + $0xd8] sm:$0xf0]  ;;  %v1958_v35 = vor.u32 %v2298_v27, %v1957_v26 }
  0x95   :  { %v2885_v51 = vpack.c.bf16 %v153_v48, %v149_v37  ;;  %v2210_v37 = vld [vmem:[%s3395_s3 + $0x74] sm:$0xf0]  ;;  %v1734_v45 = vor.u32 %v2242_v39, %v1733_v38  ;;  %v1589_v48 = vld [vmem:[%s3395_s3 + $0x48] sm:$0xf]  ;;  %v1783_v34 = vld [vmem:[%s3395_s3 + $0x1d8] sm:$0xf0] }
  0x96   :  { %v2893_v56 = vpack.c.bf16 %v154_v49, %v150_v42  ;;  %v1877_v42 = vld [vmem:[%s3395_s3 + $0x288] sm:$0xf]  ;;  %v1606_v44 = vor.u32 %v2210_v37, %v1605_v36  ;;  %v2206_v49 = vld [vmem:[%s3395_s3 + $0x54] sm:$0xf0]  ;;  %v2236_v26 = vld [vmem:[%s3395_s3 + $0x14c] sm:$0xf] }
  0x97   :  { %947 = vmatmul.bf16.vlgmr.msrb.gmra.mxu0 %v2885_v51  ;;  %v1861_v55 = vld [vmem:[%s3395_s3 + $0x268] sm:$0xf]  ;;  %v1590_v58 = vor.u32 %v2206_v49, %v1589_v48  ;;  %v2262_v37 = vld [vmem:[%s3395_s3 + $0x214] sm:$0xf0]  ;;  %v1639_v48 = vld [vmem:[%s3395_s3 + $0xb8] sm:$0xf0] }
  0x98   :  { %v132_v60 = vpop.f32.mrf.mxu2  ;;  %961 = vmatmul.bf16.vlgmr.msrb.gmra.mxu1 %v2893_v56  ;;  %1051 = vmatpush.bf16.msrb.mxu0 %v1670_v50  ;;  %v1717_v50 = vld [vmem:[%s3395_s3 + $0x148] sm:$0xf]  ;;  %v1862_v2 = vor.u32 %v2274_v57, %v1861_v55  ;;  %v2294_v39 = vld [vmem:[%s3395_s3 + $0x314] sm:$0xf0]  ;;  %v2248_v49 = vld [vmem:[%s3395_s3 + $0x1ac] sm:$0xf] }
  0x99   :  { %v133_v61 = vadd.f32 %v132_v60, %v43_v43  ;;  %v146_v62 = vpop.f32.mrf.mxu3  ;;  %1065 = vmatpush.bf16.msrb.mxu1 %v1798_v52  ;;  %v2278_v43 = vld [vmem:[%s3395_s3 + $0x294] sm:$0xf0]  ;;  %v1989_v60 = vld [vmem:[%s3395_s3 + $0x368] sm:$0xf]  ;;  %v2284_v55 = vld [vmem:[%s3395_s3 + $0x2cc] sm:$0xf] }
  0x9a   :  { %v147_v3 = vadd.f32 %v146_v62, %v44_v47  ;;  %v2310_v47 = vld [vmem:[%s3395_s3 + $0x394] sm:$0xf0]  ;;  %v1878_v53 = vor.u32 %v2278_v43, %v1877_v42  ;;  %v1573_v62 = vld [vmem:[%s3395_s3 + $0x28] sm:$0xf]  ;;  %v1911_v57 = vld [vmem:[%s3395_s3 + $0x2d8] sm:$0xf0] }
  0x9b   :  { %v155_v9 = vmax.f32 %v133_v61, 0.0  ;;  %v2238_v52 = vld [vmem:[%s3395_s3 + $0x154] sm:$0xf0]  ;;  %v2006_v54 = vor.u32 %v2310_v47, %v2005_v46  ;;  %v1813_v36 = vld [vmem:[%s3395_s3 + $0x208] sm:$0xf] }
  0x9c   :  { %v156_v13 = vmax.f32 %v147_v3, 0.0  ;;  %1052 = vmatpush.bf16.msrb.mxu0 %v1654_v63  ;;  %v1718_v59 = vor.u32 %v2238_v52, %v1717_v50  ;;  %v2306_v61 = vld [vmem:[%s3395_s3 + $0x374] sm:$0xf0]  ;;  %v1941_v38 = vld [vmem:[%s3395_s3 + $0x308] sm:$0xf]  ;;  %v1814_v47 = vor.u32 %v2262_v37, %v1813_v36 }
  0x9d   :  { %v2927_v15 = vpack.c.bf16 %v155_v9, %v151_v8  ;;  %1066 = vmatpush.bf16.msrb.mxu1 %v1782_v4  ;;  %v2202_v63 = vld [vmem:[%s3395_s3 + $0x34] sm:$0xf0]  ;;  %v1990_v3 = vor.u32 %v2306_v61, %v1989_v60  ;;  %v1845_v4 = vld [vmem:[%s3395_s3 + $0x248] sm:$0xf]  ;;  %v1702_v8 = vor.u32 %v2234_v1, %v1701_v0  ;;  %v2216_v46 = vld [vmem:[%s3395_s3 + $0xac] sm:$0xf]  ;;  %v1942_v52 = vor.u32 %v2294_v39, %v1941_v38 }
  0x9e   :  { %v2938_v21 = vpack.c.bf16 %v156_v13, %v152_v12  ;;  %v1574_v7 = vor.u32 %v2202_v63, %v1573_v62  ;;  %v2302_v9 = vld [vmem:[%s3395_s3 + $0x354] sm:$0xf0]  ;;  %v1685_v12 = vld [vmem:[%s3395_s3 + $0x108] sm:$0xf]  ;;  %v1767_v50 = vld [vmem:[%s3395_s3 + $0x1b8] sm:$0xf0] }
  0x9f   :  { %975 = vmatmul.bf16.vlgmr.msrb.gmra.mxu2 %v2927_v15  ;;  %v2230_v13 = vld [vmem:[%s3395_s3 + $0x114] sm:$0xf0]  ;;  %v1974_v20 = vor.u32 %v2302_v9, %v1973_v6  ;;  %v2316_v60 = vld [vmem:[%s3395_s3 + $0x3cc] sm:$0xf]  ;;  %v2039_v61 = vld [vmem:[%s3395_s3 + $0x3d8] sm:$0xf0] }
  0xa0   :  { %989 = vmatmul.bf16.vlgmr.msrb.gmra.mxu3 %v2938_v21  ;;  %1079 = vmatpush.bf16.msrb.mxu2 %v1926_v14  ;;  %v2224_v14 = vld [vmem:[%s3395_s3 + $0xec] sm:$0xf]  ;;  %v1686_v25 = vor.u32 %v2230_v13, %v1685_v12  ;;  %v1623_v63 = vld [vmem:[%s3395_s3 + $0x98] sm:$0xf0] }
  0xa1   :  { %1093 = vmatpush.bf16.msrb.mxu3 %v2054_v16  ;;  %1053 = vmatpush.bf16.msrb.mxu0 %v1638_v17  ;;  %v1846_v16 = vor.u32 %v2270_v5, %v1845_v4  ;;  %v1671_v17 = vld [vmem:[%s3395_s3 + $0xf8] sm:$0xf0]  ;;  %v2212_v62 = vld [vmem:[%s3395_s3 + $0x8c] sm:$0xf] }
  0xa2   :  { %1067 = vmatpush.bf16.msrb.mxu1 %v1766_v22  ;;  %v1829_v22 = vld [vmem:[%s3395_s3 + $0x228] sm:$0xf]  ;;  %v2244_v0 = vld [vmem:[%s3395_s3 + $0x18c] sm:$0xf]  ;;  %v1751_v1 = vld [vmem:[%s3395_s3 + $0x198] sm:$0xf0]  ;;  %v1626_v6 = vor.u32 %v2212_v62, %v1623_v63 }
  0xa3   :  { %v1830_v31 = vor.u32 %v2266_v23, %v1829_v22  ;;  %v2280_v4 = vld [vmem:[%s3395_s3 + $0x2ac] sm:$0xf]  ;;  %v1895_v5 = vld [vmem:[%s3395_s3 + $0x2b8] sm:$0xf0] }
  0xa4   :  { %1080 = vmatpush.bf16.msrb.mxu2 %v1910_v28  ;;  %v1674_v28 = vor.u32 %v2224_v14, %v1671_v17  ;;  %v2023_v9 = vld [vmem:[%s3395_s3 + $0x3b8] sm:$0xf0]  ;;  %v2240_v12 = vld [vmem:[%s3395_s3 + $0x16c] sm:$0xf]  ;;  %v1898_v14 = vor.u32 %v2280_v4, %v1895_v5 }
  0xa5   :  { %1094 = vmatpush.bf16.msrb.mxu3 %v2038_v29  ;;  %1054 = vmatpush.bf16.msrb.mxu0 %v1622_v30  ;;  %v1802_v29 = vor.u32 %v2256_v18, %v1799_v19  ;;  %v2220_v30 = vld [vmem:[%s3395_s3 + $0xcc] sm:$0xf]  ;;  %v1735_v13 = vld [vmem:[%s3395_s3 + $0x178] sm:$0xf0]  ;;  %v1610_v19 = vor.u32 %v2208_v10, %v1607_v11 }
  0xa6   :  { %1068 = vmatpush.bf16.msrb.mxu1 %v1750_v33  ;;  %v2252_v33 = vld [vmem:[%s3395_s3 + $0x1cc] sm:$0xf]  ;;  %v1658_v42 = vor.u32 %v2220_v30, %v1655_v32  ;;  %v1879_v18 = vld [vmem:[%s3395_s3 + $0x298] sm:$0xf0] }
  0xa7   :  { %1003 = vmatmul.bf16.vlgmr.msra.gmra.mxu0 %v2885_v51  ;;  %v1786_v43 = vor.u32 %v2252_v33, %v1783_v34  ;;  %v2276_v17 = vld [vmem:[%s3395_s3 + $0x28c] sm:$0xf]  ;;  %v2007_v23 = vld [vmem:[%s3395_s3 + $0x398] sm:$0xf0] }
  0xa8   :  { %1081 = vmatpush.bf16.msrb.mxu2 %v1894_v40  ;;  %1017 = vmatmul.bf16.vlgmr.msra.gmra.mxu1 %v2893_v56  ;;  %v2288_v40 = vld [vmem:[%s3395_s3 + $0x2ec] sm:$0xf]  ;;  %v1719_v27 = vld [vmem:[%s3395_s3 + $0x158] sm:$0xf0] }
  0xa9   :  { %1095 = vmatpush.bf16.msrb.mxu3 %v2022_v41  ;;  %1055 = vmatpush.bf16.msrb.mxu0 %v1606_v44  ;;  %v1927_v41 = vld [vmem:[%s3395_s3 + $0x2f8] sm:$0xf0]  ;;  %v2320_v44 = vld [vmem:[%s3395_s3 + $0x3ec] sm:$0xf]  ;;  %v1722_v33 = vor.u32 %v2236_v26, %v1719_v27  ;;  %v2331_v27 = vld [vmem:[%s3397_s5 + $0x40] sm:$0xff] }
  0xaa   :  { %1069 = vmatpush.bf16.msrb.mxu1 %v1734_v45  ;;  %v2055_v45 = vld [vmem:[%s3395_s3 + $0x3f8] sm:$0xf0]  ;;  %v2308_v22 = vld [vmem:[%s3395_s3 + $0x38c] sm:$0xf] }
  0xab   :  { %v2272_v30 = vld [vmem:[%s3395_s3 + $0x26c] sm:$0xf]  ;;  %v1575_v37 = vld [vmem:[%s3395_s3 + $0x38] sm:$0xf0] }
  0xac   :  { %1082 = vmatpush.bf16.msrb.mxu2 %v1878_v53  ;;  %v1930_v53 = vor.u32 %v2288_v40, %v1927_v41  ;;  %v2304_v34 = vld [vmem:[%s3395_s3 + $0x36c] sm:$0xf]  ;;  %v1703_v39 = vld [vmem:[%s3395_s3 + $0x138] sm:$0xf0] }
  0xad   :  { %1096 = vmatpush.bf16.msrb.mxu3 %v2006_v54  ;;  %1056 = vmatpush.bf16.msrb.mxu0 %v1590_v58  ;;  %v2058_v54 = vor.u32 %v2320_v44, %v2055_v45  ;;  %v1642_v58 = vor.u32 %v2216_v46, %v1639_v48  ;;  %v2200_v36 = vld [vmem:[%s3395_s3 + $0x2c] sm:$0xf]  ;;  %v2330_v62 = vld [vmem:[%s3397_s5 + $0x38] sm:$0xff] }
  0xae   :  { %1070 = vmatpush.bf16.msrb.mxu1 %v1718_v59  ;;  %v1770_v59 = vor.u32 %v2248_v49, %v1767_v50  ;;  %v2232_v38 = vld [vmem:[%s3395_s3 + $0x12c] sm:$0xf]  ;;  %v1578_v44 = vor.u32 %v2200_v36, %v1575_v37  ;;  %v1559_v49 = vld [vmem:[%s3395_s3 + $0x18] sm:$0xf0] }
  0xaf   :  { %1031 = vmatmul.bf16.vlgmr.msra.gmra.mxu2 %v2927_v15  ;;  %v1706_v45 = vor.u32 %v2232_v38, %v1703_v39  ;;  %v2300_v46 = vld [vmem:[%s3395_s3 + $0x34c] sm:$0xf]  ;;  %v1943_v4 = vld [vmem:[%s3395_s3 + $0x318] sm:$0xf0]  ;;  %v2341_v38 = vld [vmem:[%s3397_s5 + $0x90] sm:$0xff] }
  0xb0   :  { %1045 = vmatmul.bf16.vlgmr.msra.gmra.mxu3 %v2938_v21  ;;  %1083 = vmatpush.bf16.msrb.mxu2 %v1862_v2  ;;  %v1914_v2 = vor.u32 %v2284_v55, %v1911_v57  ;;  %v2196_v48 = vld [vmem:[%s3395_s3 + $0xc] sm:$0xf]  ;;  %v1831_v57 = vld [vmem:[%s3395_s3 + $0x238] sm:$0xf0] }
  0xb1   :  { %1097 = vmatpush.bf16.msrb.mxu3 %v1990_v3  ;;  %1057 = vmatpush.bf16.msrb.mxu0 %v1574_v7  ;;  %v2042_v3 = vor.u32 %v2316_v60, %v2039_v61  ;;  %v1754_v7 = vor.u32 %v2244_v0, %v1751_v1  ;;  %v2228_v50 = vld [vmem:[%s3395_s3 + $0x10c] sm:$0xf]  ;;  %v1959_v61 = vld [vmem:[%s3395_s3 + $0x338] sm:$0xf0] }
  0xb2   :  { %1071 = vmatpush.bf16.msrb.mxu1 %v1702_v8  ;;  %v2312_v8 = vld [vmem:[%s3395_s3 + $0x3ac] sm:$0xf] }
  0xb3   :  { %v2264_v55 = vld [vmem:[%s3395_s3 + $0x22c] sm:$0xf] }
  0xb4   :  { %1084 = vmatpush.bf16.msrb.mxu2 %v1846_v16  ;;  %v2026_v16 = vor.u32 %v2312_v8, %v2023_v9  ;;  %v2296_v60 = vld [vmem:[%s3395_s3 + $0x32c] sm:$0xf]  ;;  %v1834_v63 = vor.u32 %v2264_v55, %v1831_v57  ;;  %v2337_v9 = vld [vmem:[%s3397_s5 + $0x70] sm:$0xff] }
  0xb5   :  { %1098 = vmatpush.bf16.msrb.mxu3 %v1974_v20  ;;  %1058 = vmatpush.bf16.msrb.mxu0 %v1558_v24  ;;  %v1738_v20 = vor.u32 %v2240_v12, %v1735_v13  ;;  %v2204_v24 = vld [vmem:[%s3395_s3 + $0x4c] sm:$0xf]  ;;  %v1962_v0 = vor.u32 %v2296_v60, %v1959_v61  ;;  %v2323_v12 = vld [vmem:[%s3397_s5] sm:$0xff] }
  0xb6   :  { %1072 = vmatpush.bf16.msrb.mxu1 %v1686_v25  ;;  %v1591_v25 = vld [vmem:[%s3395_s3 + $0x58] sm:$0xf0]  ;;  %v2260_v1 = vld [vmem:[%s3395_s3 + $0x20c] sm:$0xf]  ;;  %v2335_v13 = vld [vmem:[%s3397_s5 + $0x60] sm:$0xff] }
  0xb7   :  { %v1594_v32 = vor.u32 %v2204_v24, %v1591_v25  ;;  %v2328_v8 = vld [vmem:[%s3397_s5 + $0x28] sm:$0xff] }
  0xb8   :  { %1085 = vmatpush.bf16.msrb.mxu2 %v1830_v31  ;;  %1059 = vmatmul.bf16.vlgmr.msrb.gmra.mxu0 %v2885_v51  ;;  %v1863_v31 = vld [vmem:[%s3395_s3 + $0x278] sm:$0xf0]  ;;  %v2324_v10 = vld [vmem:[%s3397_s5 + $0x8] sm:$0xff] }
  0xb9   :  { %1107 = vmatpush.bf16.msra.mxu0 %v1674_v28  ;;  %1099 = vmatpush.bf16.msrb.mxu3 %v1958_v35  ;;  %v1882_v28 = vor.u32 %v2276_v17, %v1879_v18  ;;  %v1991_v35 = vld [vmem:[%s3395_s3 + $0x378] sm:$0xf0]  ;;  %v1866_v40 = vor.u32 %v2272_v30, %v1863_v31  ;;  %v2336_v11 = vld [vmem:[%s3397_s5 + $0x68] sm:$0xff] }
  0xba   :  { %1121 = vmatpush.bf16.msra.mxu1 %v1802_v29  ;;  %v2010_v29 = vor.u32 %v2308_v22, %v2007_v23  ;;  %v1994_v41 = vor.u32 %v2304_v34, %v1991_v35  ;;  %v3332_v22 = vld [vmem:[%s3396_s4] sm:$0xf]  ;;  %v2332_v23 = vld [vmem:[%s3397_s5 + $0x48] sm:$0xff]  ;;  %s1497_s4 = sshll.u32 %s2385_s26, 4  ;;  %s1498_s4 = int_to_ptr.vmem [resolvable:$true] %s1497_s4 }
  0xbb   :  { %1073 = vmatmul.bf16.vlgmr.msrb.gmra.mxu1 %v2893_v56  ;;  %v2344_v24 = vld [vmem:[%s3397_s5 + $0xa8] sm:$0xff]  ;;  %v291_v25 = vperm.slane %v3332_v22, 0 }
  0xbc   :  { %1086 = vmatpush.bf16.msrb.mxu2 %v1814_v47  ;;  %v1975_v47 = vld [vmem:[%s3395_s3 + $0x358] sm:$0xf0] }
  0xbd   :  { %1108 = vmatpush.bf16.msra.mxu0 %v1658_v42  ;;  %1100 = vmatpush.bf16.msrb.mxu3 %v1942_v52  ;;  %v2268_v42 = vld [vmem:[%s3395_s3 + $0x24c] sm:$0xf]  ;;  %v1687_v52 = vld [vmem:[%s3395_s3 + $0x118] sm:$0xf0] }
  0xbe   :  { %1122 = vmatpush.bf16.msra.mxu1 %v1786_v43  ;;  %v1847_v43 = vld [vmem:[%s3395_s3 + $0x258] sm:$0xf0] }
  0xbf   :  { %1087 = vmatmul.bf16.vlgmr.msrb.gmra.mxu2 %v2927_v15 }
  0xc0   :  { %1135 = vmatpush.bf16.msra.mxu2 %v1930_v53  ;;  %1101 = vmatmul.bf16.vlgmr.msrb.gmra.mxu3 %v2938_v21  ;;  %v1850_v53 = vor.u32 %v2268_v42, %v1847_v43 }
  0xc1   :  { %1149 = vmatpush.bf16.msra.mxu3 %v2058_v54  ;;  %1109 = vmatpush.bf16.msra.mxu0 %v1642_v58  ;;  %v1978_v54 = vor.u32 %v2300_v46, %v1975_v47  ;;  %v1562_v58 = vor.u32 %v2196_v48, %v1559_v49  ;;  %v292_v46 = vperm.slane %v3332_v22, 1 }
  0xc2   :  { %1123 = vmatpush.bf16.msra.mxu1 %v1770_v59  ;;  %v1690_v59 = vor.u32 %v2228_v50, %v1687_v52  ;;  %v2339_v52 = vld [vmem:[%s3397_s5 + $0x80] sm:$0xff] }
  0xc4   :  { %1136 = vmatpush.bf16.msra.mxu2 %v1914_v2  ;;  %v1815_v2 = vld [vmem:[%s3395_s3 + $0x218] sm:$0xf0] }
  0xc5   :  { %1150 = vmatpush.bf16.msra.mxu3 %v2042_v3  ;;  %1110 = vmatpush.bf16.msra.mxu0 %v1626_v6  ;;  %v2292_v3 = vld [vmem:[%s3395_s3 + $0x30c] sm:$0xf]  ;;  %v1818_v5 = vor.u32 %v2260_v1, %v1815_v2 }
  0xc6   :  { %1124 = vmatpush.bf16.msra.mxu1 %v1754_v7  ;;  %v1946_v6 = vor.u32 %v2292_v3, %v1943_v4  ;;  %v2329_v7 = vld [vmem:[%s3397_s5 + $0x30] sm:$0xff] }
  0xc8   :  { %1137 = vmatpush.bf16.msra.mxu2 %v1898_v14  ;;  %v2334_v14 = vld [vmem:[%s3397_s5 + $0x58] sm:$0xff] }
  0xc9   :  { %1151 = vmatpush.bf16.msra.mxu3 %v2026_v16  ;;  %1111 = vmatpush.bf16.msra.mxu0 %v1610_v19  ;;  %v2346_v16 = vld [vmem:[%s3397_s5 + $0xb8] sm:$0xff]  ;;  %v2333_v19 = vld [vmem:[%s3397_s5 + $0x50] sm:$0xff] }
  0xca   :  { %1125 = vmatpush.bf16.msra.mxu1 %v1738_v20  ;;  %v2345_v20 = vld [vmem:[%s3397_s5 + $0xb0] sm:$0xff] }
  0xcc   :  { %1138 = vmatpush.bf16.msra.mxu2 %v1882_v28  ;;  %v2343_v28 = vld [vmem:[%s3397_s5 + $0xa0] sm:$0xff] }
  0xcd   :  { %1152 = vmatpush.bf16.msra.mxu3 %v2010_v29  ;;  %1112 = vmatpush.bf16.msra.mxu0 %v1594_v32 }
  0xce   :  { %1126 = vmatpush.bf16.msra.mxu1 %v1722_v33  ;;  %v2342_v33 = vld [vmem:[%s3397_s5 + $0x98] sm:$0xff] }
  0xd0   :  { %1139 = vmatpush.bf16.msra.mxu2 %v1866_v40 }
  0xd1   :  { %1153 = vmatpush.bf16.msra.mxu3 %v1994_v41  ;;  %1113 = vmatpush.bf16.msra.mxu0 %v1578_v44 }
  0xd2   :  { %1127 = vmatpush.bf16.msra.mxu1 %v1706_v45  ;;  %v2340_v45 = vld [vmem:[%s3397_s5 + $0x88] sm:$0xff] }
  0xd4   :  { %1140 = vmatpush.bf16.msra.mxu2 %v1850_v53  ;;  %v2354_v53 = vld [vmem:[%s3397_s5 + $0xf8] sm:$0xff] }
  0xd5   :  { %1154 = vmatpush.bf16.msra.mxu3 %v1978_v54  ;;  %1114 = vmatpush.bf16.msra.mxu0 %v1562_v58 }
  0xd6   :  { %1128 = vmatpush.bf16.msra.mxu1 %v1690_v59  ;;  %v2353_v59 = vld [vmem:[%s3397_s5 + $0xf0] sm:$0xff] }
  0xd8   :  { %1141 = vmatpush.bf16.msra.mxu2 %v1834_v63  ;;  %1115 = vmatmul.bf16.vlgmr.msra.gmra.mxu0 %v2885_v51  ;;  %v2327_v51 = vld [vmem:[%s3397_s5 + $0x20] sm:$0xff]  ;;  %v2352_v63 = vld [vmem:[%s3397_s5 + $0xe8] sm:$0xff] }
  0xd9   :  { %1435 = vmatpush.bf16.msrb.mxu0 %v2330_v62  ;;  %1155 = vmatpush.bf16.msra.mxu3 %v1962_v0 }
  0xda   :  { %1129 = vmatmul.bf16.vlgmr.msra.gmra.mxu1 %v2893_v56  ;;  %v2326_v56 = vld [vmem:[%s3397_s5 + $0x18] sm:$0xff] }
  0xdc   :  { %1142 = vmatpush.bf16.msra.mxu2 %v1818_v5 }
  0xdd   :  { %1156 = vmatpush.bf16.msra.mxu3 %v1946_v6  ;;  %1436 = vmatpush.bf16.msrb.mxu0 %v2329_v7  ;;  %v2351_v7 = vld [vmem:[%s3397_s5 + $0xe0] sm:$0xff] }
  0xdf   :  { %1143 = vmatmul.bf16.vlgmr.msra.gmra.mxu2 %v2927_v15  ;;  %v2338_v15 = vld [vmem:[%s3397_s5 + $0x78] sm:$0xff] }
  0xe0   :  { %1157 = vmatmul.bf16.vlgmr.msra.gmra.mxu3 %v2938_v21  ;;  %1449 = vmatpush.bf16.msrb.mxu1 %v2338_v15  ;;  %v2325_v21 = vld [vmem:[%s3397_s5 + $0x10] sm:$0xff] }
  0xe1   :  { %1437 = vmatpush.bf16.msrb.mxu0 %v2328_v8  ;;  %1463 = vmatpush.bf16.msrb.mxu2 %v2346_v16  ;;  %v2349_v16 = vld [vmem:[%s3397_s5 + $0xd0] sm:$0xff] }
  0xe2   :  { %1477 = vmatpush.bf16.msrb.mxu3 %v2354_v53 }
  0xe4   :  { %1450 = vmatpush.bf16.msrb.mxu1 %v2337_v9  ;;  %v2350_v9 = vld [vmem:[%s3397_s5 + $0xd8] sm:$0xff] }
  0xe5   :  { %1438 = vmatpush.bf16.msrb.mxu0 %v2327_v51  ;;  %1464 = vmatpush.bf16.msrb.mxu2 %v2345_v20  ;;  %v293_v51 = vperm.slane %v3332_v22, 2  ;;  %v2348_v20 = vld [vmem:[%s3397_s5 + $0xc8] sm:$0xff] }
  0xe6   :  { %1478 = vmatpush.bf16.msrb.mxu3 %v2353_v59 }
  0xe8   :  { %1451 = vmatpush.bf16.msrb.mxu1 %v2336_v11 }
  0xe9   :  { %1439 = vmatpush.bf16.msrb.mxu0 %v2326_v56  ;;  %1465 = vmatpush.bf16.msrb.mxu2 %v2344_v24 }
  0xea   :  { %1479 = vmatpush.bf16.msrb.mxu3 %v2352_v63 }
  0xec   :  { %1452 = vmatpush.bf16.msrb.mxu1 %v2335_v13 }
  0xed   :  { %1440 = vmatpush.bf16.msrb.mxu0 %v2325_v21  ;;  %1466 = vmatpush.bf16.msrb.mxu2 %v2343_v28  ;;  %v2347_v28 = vld [vmem:[%s3397_s5 + $0xc0] sm:$0xff] }
  0xee   :  { %1480 = vmatpush.bf16.msrb.mxu3 %v2351_v7 }
  0xf0   :  { %1453 = vmatpush.bf16.msrb.mxu1 %v2334_v14 }
  0xf1   :  { %1441 = vmatpush.bf16.msrb.mxu0 %v2324_v10  ;;  %1467 = vmatpush.bf16.msrb.mxu2 %v2342_v33 }
  0xf2   :  { %1481 = vmatpush.bf16.msrb.mxu3 %v2350_v9 }
  0xf4   :  { %1454 = vmatpush.bf16.msrb.mxu1 %v2333_v19 }
  0xf5   :  { %1442 = vmatpush.bf16.msrb.mxu0 %v2323_v12  ;;  %1468 = vmatpush.bf16.msrb.mxu2 %v2341_v38 }
  0xf6   :  { %1482 = vmatpush.bf16.msrb.mxu3 %v2349_v16 }
  0xf8   :  { %1455 = vmatpush.bf16.msrb.mxu1 %v2332_v23 }
  0xf9   :  { %1469 = vmatpush.bf16.msrb.mxu2 %v2340_v45 }
  0xfa   :  { %1483 = vmatpush.bf16.msrb.mxu3 %v2348_v20 }
  0xfc   :  { %1456 = vmatpush.bf16.msrb.mxu1 %v2331_v27 }
  0xfd   :  { %1470 = vmatpush.bf16.msrb.mxu2 %v2339_v52 }
  0xfe   :  { %1484 = vmatpush.bf16.msrb.mxu3 %v2347_v28 }
 0x114   :  { %v948_v17 = vpop.f32.mrf.mxu0 }
 0x115   :  { %v962_v18 = vpop.f32.mrf.mxu1  ;;  %v949_v29 = vadd.f32 %v948_v17, %v291_v25 }
 0x117   :  { %v963_v34 = vadd.f32 %v962_v18, %v949_v29 }
 0x11c   :  { %v950_v26 = vpop.f32.mrf.mxu0 }
 0x11d   :  { %v964_v30 = vpop.f32.mrf.mxu1  ;;  %v951_v35 = vadd.f32 %v950_v26, %v291_v25 }
 0x11f   :  { %v965_v39 = vadd.f32 %v964_v30, %v951_v35  ;;  %v294_v35 = vperm.slane %v3332_v22, 3 }
 0x122   :  { %v976_v31 = vpop.f32.mrf.mxu2 }
 0x123   :  { %v990_v32 = vpop.f32.mrf.mxu3  ;;  %v977_v37 = vadd.f32 %v976_v31, %v963_v34 }
 0x124   :  { %v1004_v36 = vpop.f32.mrf.mxu0 }
 0x125   :  { %v991_v41 = vadd.f32 %v990_v32, %v977_v37  ;;  %v1018_v42 = vpop.f32.mrf.mxu1  ;;  %v1005_v54 = vadd.f32 %v1004_v36, %v292_v46 }
 0x127   :  { %v1163_v49 = vmax.f32 %v991_v41, 0.0  ;;  %v1019_v60 = vadd.f32 %v1018_v42, %v1005_v54 }
 0x12a   :  { %v978_v40 = vpop.f32.mrf.mxu2 }
 0x12b   :  { %v979_v43 = vadd.f32 %v978_v40, %v965_v39  ;;  %v992_v44 = vpop.f32.mrf.mxu3 }
 0x12c   :  { %v1006_v48 = vpop.f32.mrf.mxu0 }
 0x12d   :  { %v993_v47 = vadd.f32 %v992_v44, %v979_v43  ;;  %v1007_v61 = vadd.f32 %v1006_v48, %v292_v46  ;;  %v1020_v62 = vpop.f32.mrf.mxu1 }
 0x12f   :  { %v1167_v50 = vmax.f32 %v993_v47, 0.0  ;;  %v1021_v2 = vadd.f32 %v1020_v62, %v1007_v61 }
 0x131   :  { %v1171_v55 = vpack.c.bf16 %v1167_v50, %v1163_v49 }
 0x132   :  { %v1032_v57 = vpop.f32.mrf.mxu2 }
 0x133   :  { %v1046_v58 = vpop.f32.mrf.mxu3  ;;  %1443 = vmatmul.bf16.vlgmr.msrb.gmra.mxu0 %v1171_v55  ;;  %v1033_v0 = vadd.f32 %v1032_v57, %v1019_v60  ;;  %v2358_v55 = vld [vmem:[%s3398_s6] ss:$0 sm:$0xff]  ;;  %s2386_s6 = smov 128  }
 0x135   :  { %v1060_v1 = vpop.f32.mrf.mxu0  ;;  %v1047_v4 = vadd.f32 %v1046_v58, %v1033_v0 }
 0x136   :  { %v1061_v11 = vadd.f32 %v1060_v1, %v293_v51 }
 0x137   :  { %v1164_v56 = vmax.f32 %v1047_v4, 0.0 }
 0x138   :  { %v1074_v15 = vpop.f32.mrf.mxu1 }
 0x139   :  { %v1075_v17 = vadd.f32 %v1074_v15, %v1061_v11 }
 0x13a   :  { %v1034_v3 = vpop.f32.mrf.mxu2 }
 0x13b   :  { %v1035_v5 = vadd.f32 %v1034_v3, %v1021_v2  ;;  %v1048_v6 = vpop.f32.mrf.mxu3 }
 0x13d   :  { %v1049_v8 = vadd.f32 %v1048_v6, %v1035_v5  ;;  %v1062_v12 = vpop.f32.mrf.mxu0 }
 0x13e   :  { %v1063_v18 = vadd.f32 %v1062_v12, %v293_v51 }
 0x13f   :  { %v1168_v21 = vmax.f32 %v1049_v8, 0.0 }
 0x140   :  { %v1076_v23 = vpop.f32.mrf.mxu1 }
 0x141   :  { %v1172_v10 = vpack.c.bf16 %v1168_v21, %v1164_v56  ;;  %v1077_v24 = vadd.f32 %v1076_v23, %v1063_v18 }
 0x142   :  { %v1088_v13 = vpop.f32.mrf.mxu2 }
 0x143   :  { %v1102_v14 = vpop.f32.mrf.mxu3  ;;  %1457 = vmatmul.bf16.vlgmr.msrb.gmra.mxu1 %v1172_v10  ;;  %v1089_v19 = vadd.f32 %v1088_v13, %v1075_v17 }
 0x145   :  { %v1103_v26 = vadd.f32 %v1102_v14, %v1089_v19 }
 0x147   :  { %v1165_v31 = vmax.f32 %v1103_v26, 0.0 }
 0x14a   :  { %v1090_v25 = vpop.f32.mrf.mxu2 }
 0x14b   :  { %v1091_v27 = vadd.f32 %v1090_v25, %v1077_v24  ;;  %v1104_v29 = vpop.f32.mrf.mxu3 }
 0x14d   :  { %v1105_v30 = vadd.f32 %v1104_v29, %v1091_v27 }
 0x14f   :  { %v1169_v32 = vmax.f32 %v1105_v30, 0.0 }
 0x151   :  { %v1173_v33 = vpack.c.bf16 %v1169_v32, %v1165_v31 }
 0x153   :  { %1471 = vmatmul.bf16.vlgmr.msrb.gmra.mxu2 %v1173_v33 }
 0x155   :  { %v1116_v34 = vpop.f32.mrf.mxu0 }
 0x156   :  { %v1117_v37 = vadd.f32 %v1116_v34, %v294_v35 }
 0x157   :  { %v1130_v36 = vpop.f32.mrf.mxu1 }
 0x158   :  { %v1131_v41 = vadd.f32 %v1130_v36, %v1117_v37 }
 0x15d   :  { %v1118_v38 = vpop.f32.mrf.mxu0 }
 0x15e   :  { %v1119_v42 = vadd.f32 %v1118_v38, %v294_v35 }
 0x15f   :  { %v1132_v44 = vpop.f32.mrf.mxu1 }
 0x160   :  { %v1133_v45 = vadd.f32 %v1132_v44, %v1119_v42 }
 0x162   :  { %v1144_v39 = vpop.f32.mrf.mxu2 }
 0x163   :  { %v1158_v40 = vpop.f32.mrf.mxu3  ;;  %v1145_v43 = vadd.f32 %v1144_v39, %v1131_v41 }
 0x165   :  { %v1159_v47 = vadd.f32 %v1158_v40, %v1145_v43 }
 0x167   :  { %v1166_v52 = vmax.f32 %v1159_v47, 0.0 }
 0x16a   :  { %v1146_v46 = vpop.f32.mrf.mxu2 }
 0x16b   :  { %v1147_v48 = vadd.f32 %v1146_v46, %v1133_v45  ;;  %v1160_v49 = vpop.f32.mrf.mxu3 }
 0x16d   :  { %v1161_v50 = vadd.f32 %v1160_v49, %v1147_v48 }
 0x16f   :  { %v1170_v53 = vmax.f32 %v1161_v50, 0.0 }
 0x171   :  { %v1174_v54 = vpack.c.bf16 %v1170_v53, %v1166_v52 }
 0x173   :  { %1485 = vmatmul.bf16.vlgmr.msrb.gmra.mxu3 %v1174_v54 }
 0x1b0   :  { %v1444_v22 = vpop.f32.mrf.mxu0 }
 0x1b1   :  { %v1445_v59 = vadd.f32 %v2358_v55, %v1444_v22 }
 0x1b8   :  { %v1446_v62 = vpop.f32.mrf.mxu0 }
 0x1b9   :  { %v1447_v2 = vadd.f32 %v2358_v55, %v1446_v62 }
 0x1c0   :  { %v1458_v57 = vpop.f32.mrf.mxu1 }
 0x1c1   :  { %v1459_v60 = vadd.f32 %v1458_v57, %v1445_v59 }
 0x1c8   :  { %v1460_v1 = vpop.f32.mrf.mxu1 }
 0x1c9   :  { %v1461_v4 = vadd.f32 %v1460_v1, %v1447_v2 }
 0x1d6   :  { %v1472_v58 = vpop.f32.mrf.mxu2 }
 0x1d7   :  { %v1473_v61 = vadd.f32 %v1472_v58, %v1459_v60 }
 0x1de   :  { %v1474_v3 = vpop.f32.mrf.mxu2 }
 0x1df   :  { %v1475_v5 = vadd.f32 %v1474_v3, %v1461_v4 }
 0x1f6   :  { %v1486_v63 = vpop.f32.mrf.mxu3 }
 0x1f7   :  { %v1487_v0 = vadd.f32 %v1486_v63, %v1473_v61 }
 0x1f9   :  { %1491 = vst [vmem:[#allocation2] sm:$0xff] %v1487_v0 }
 0x1fe   :  { %v1488_v6 = vpop.f32.mrf.mxu3 }
 0x1ff   :  { %v1489_v7 = vadd.f32 %v1488_v6, %v1475_v5 }
 0x201   :  { %1492 = vst [vmem:[#allocation2 + $0x8] sm:$0xff] %v1489_v7 }
 0x202   :  { %1505 = dma.vmem_to_hbm [thread:$0]  %s1498_s4, 256, %s1500_s29, [#allocation3], %s2386_s6, %s2386_s6, %s2387_s30  }
 0x203   :  { %2383 = dma.done.wait [#allocation3], 256  }
 0x204   :  { %2384 = vsyncadd [#allocation3], 4294967040 }
 0x205   :  { %1510 = vsyncpa [#allocation3], 1 }

</bundles_post_ra>
